<compile_context>
chip_gen: v5e
topology: v5e:2x2
jax: 0.10.0
libtpu: 0.0.40
codegen_flags: <defaults>
</compile_context>

<pallas_src>
import functools

import jax
import jax.numpy as jnp
from jax import lax
from jax.experimental import pallas as pl
from jax.experimental.pallas import tpu as pltpu


def _round_up(x, m):
    return ((x + m - 1) // m) * m


# ----------------------------- Pallas kernel ------------------------------- #

def _actor_kernel(x_ref,
                  w1_ref, b1_ref,
                  w2_ref, b2_ref,
                  w3_ref, b3_ref,
                  out_ref,
                  *, act_dim, log_std_min, log_std_max):
    # Layer 1: Linear + ReLU  (bf16 MXU operands, f32 accumulate, f32 VPU work)
    h1 = jnp.dot(x_ref[...], w1_ref[...], preferred_element_type=jnp.float32)
    h1 = jnp.maximum(h1 + b1_ref[...], 0.0)                    # (TB, H) f32

    # Layer 2: Linear + ReLU
    h2 = jnp.dot(h1.astype(jnp.bfloat16), w2_ref[...],
                 preferred_element_type=jnp.float32)
    h2 = jnp.maximum(h2 + b2_ref[...], 0.0)                    # (TB, H) f32

    # Layer 3: one fused matmul producing [mu | log_std | pad]   (TB, A2pad)
    out = jnp.dot(h2.astype(jnp.bfloat16), w3_ref[...],
                  preferred_element_type=jnp.float32)
    out = out + b3_ref[...]

    # std = exp(clip(log_std)) on the non-mu lanes; a lane-index select keeps
    # everything in-place (VPU select + EUP exp), no slice/concat.  Pad lanes
    # get exp(clip(0)) = 1 and are discarded by the wrapper.
    lane = lax.broadcasted_iota(jnp.int32, out.shape, dimension=1)
    std_all = jnp.exp(jnp.clip(out, log_std_min, log_std_max))
    out_ref[...] = jnp.where(lane < act_dim, out, std_all).astype(out_ref.dtype)


# --------------------- One-time parameter preprocessing --------------------- #

def preprocess_actor_params(params):
    """Hoisted glue, call ONCE (not per environment step):
       - transpose weights to (in, out), cast to bf16,
       - zero-pad the fused head (w3/b3) out-dim to a multiple of 128 lanes so
         the kernel's output block is lane-dense (unmasked stores),
       - reshape biases to (1, out) f32."""
    w3 = params["w3"].T.astype(jnp.bfloat16)                   # (H, 2A)
    b3 = params["b3"].reshape(1, -1).astype(jnp.float32)       # (1, 2A)
    a2 = w3.shape[1]
    a2_pad = _round_up(a2, 128)
    if a2_pad != a2:
        w3 = jnp.pad(w3, ((0, 0), (0, a2_pad - a2)))
        b3 = jnp.pad(b3, ((0, 0), (0, a2_pad - a2)))
    return {
        "w1": params["w1"].T.astype(jnp.bfloat16),             # (S, H)
        "w2": params["w2"].T.astype(jnp.bfloat16),             # (H, H)
        "w3": w3,                                              # (H, A2pad)
        "b1": params["b1"].reshape(1, -1).astype(jnp.float32),
        "b2": params["b2"].reshape(1, -1).astype(jnp.float32),
        "b3": b3,
        "act_dim": int(a2 // 2),
    }


# ------------------------------ Wrapper ------------------------------------ #

@functools.partial(jax.jit,
                   static_argnames=("act_dim", "log_std_min", "log_std_max",
                                    "block_b"))
def actor_forward(state, prepped, *, act_dim, log_std_min=-20.0,
                  log_std_max=2.0, block_b=512):
    """Returns (mu, std): parameters of Normal(mu, std) from Actor.forward."""
    w1, w2, w3 = prepped["w1"], prepped["w2"], prepped["w3"]
    b1, b2, b3 = prepped["b1"], prepped["b2"], prepped["b3"]
    B, S = state.shape
    H = w1.shape[1]
    A2pad = w3.shape[1]
    A = act_dim

    # Batch tiling: weights stay resident, batch tiles are pipelined.
    TB = min(block_b, _round_up(B, 16))        # multiple of 16 (bf16 sublanes)
    B_pad = _round_up(B, TB)
    x = state.astype(jnp.bfloat16)
    if B_pad != B:
        x = jnp.pad(x, ((0, B_pad - B), (0, 0)))

    kernel = functools.partial(_actor_kernel, act_dim=A,
                               log_std_min=log_std_min,
                               log_std_max=log_std_max)

    out = pl.pallas_call(
        kernel,
        out_shape=jax.ShapeDtypeStruct((B_pad, A2pad), jnp.float32),
        grid=(B_pad // TB,),
        in_specs=[
            pl.BlockSpec((TB, S), lambda i: (i, 0)),     # state tile (pipelined)
            pl.BlockSpec((S, H), lambda i: (0, 0)),      # resident weights/biases
            pl.BlockSpec((1, H), lambda i: (0, 0)),
            pl.BlockSpec((H, H), lambda i: (0, 0)),
            pl.BlockSpec((1, H), lambda i: (0, 0)),
            pl.BlockSpec((H, A2pad), lambda i: (0, 0)),
            pl.BlockSpec((1, A2pad), lambda i: (0, 0)),
        ],
        out_specs=pl.BlockSpec((TB, A2pad), lambda i: (i, 0)),
        compiler_params=pltpu.CompilerParams(
            dimension_semantics=("parallel",)),
    )(x, w1, b1, w2, b2, w3, b3)

    mu = out[:B, :A]
    std = out[:B, A:2 * A]
    return mu, std


# --------------------- Deterministic parameter init ------------------------ #

def init_actor_params(key, state_dim, act_dim, hidden_dim):
    """nn.Linear-style init: U(-1/sqrt(fan_in), 1/sqrt(fan_in)), deterministic."""
    def linear(key, fan_in, fan_out):
        kw, kb = jax.random.split(key)
        bound = 1.0 / jnp.sqrt(fan_in)
        w = jax.random.uniform(kw, (fan_out, fan_in), jnp.float32, -bound, bound)
        b = jax.random.uniform(kb, (fan_out,), jnp.float32, -bound, bound)
        return w, b

    k1, k2, k3 = jax.random.split(key, 3)
    w1, b1 = linear(k1, state_dim, hidden_dim)
    w2, b2 = linear(k2, hidden_dim, hidden_dim)
    w3, b3 = linear(k3, hidden_dim, 2 * act_dim)
    return {"w1": w1, "b1": b1, "w2": w2, "b2": b2, "w3": w3, "b3": b3}


# --------------------------- Pure-JAX references ---------------------------- #

def actor_forward_ref_bf16(state, params, log_std_min=-20.0, log_std_max=2.0):
    """Mirrors the kernel numerics (bf16 matmul operands, f32 accumulate)."""
    def mm(x, w):
        return jnp.dot(x.astype(jnp.bfloat16), w.T.astype(jnp.bfloat16),
                       preferred_element_type=jnp.float32)
    h1 = jnp.maximum(mm(state, params["w1"]) + params["b1"], 0.0)
    h2 = jnp.maximum(mm(h1, params["w2"]) + params["b2"], 0.0)
    out = mm(h2, params["w3"]) + params["b3"]
    A = out.shape[-1] // 2
    mu, log_std = out[:, :A], out[:, A:]
    return mu, jnp.exp(jnp.clip(log_std, log_std_min, log_std_max))


def actor_forward_ref_f32(state, params, log_std_min=-20.0, log_std_max=2.0):
    h1 = jnp.maximum(state @ params["w1"].T + params["b1"], 0.0)
    h2 = jnp.maximum(h1 @ params["w2"].T + params["b2"], 0.0)
    out = h2 @ params["w3"].T + params["b3"]
    A = out.shape[-1] // 2
    mu, log_std = out[:, :A], out[:, A:]
    return mu, jnp.exp(jnp.clip(log_std, log_std_min, log_std_max))


# --------------------------------- Main ------------------------------------ #

if __name__ == "__main__":
    B, STATE_DIM, ACT_DIM, HIDDEN = 8, 16, 4, 256
    MAX_ACTION = 1.0  # unused in forward(); only affects sample()

    key = jax.random.PRNGKey(0)
    k_param, k_state = jax.random.split(key)
    params = init_actor_params(k_param, STATE_DIM, ACT_DIM, HIDDEN)
    state = jax.random.normal(k_state, (B, STATE_DIM), jnp.float32)

    # One-time preprocessing (out of the hot path).
    prepped = preprocess_actor_params(params)

    mu, std = actor_forward(state, prepped, act_dim=prepped["act_dim"])
    jax.block_until_ready((mu, std))

    # Tight check against a bf16-matmul reference (same numerics as kernel),
    # plus a loose sanity check against full-f32 math.
    mu_bf, std_bf = actor_forward_ref_bf16(state, params)
    mu_f32, std_f32 = actor_forward_ref_f32(state, params)

    assert mu.shape == (B, ACT_DIM) and std.shape == (B, ACT_DIM)
    assert jnp.allclose(mu, mu_bf, atol=1e-3, rtol=1e-3)
    assert jnp.allclose(std, std_bf, atol=1e-3, rtol=1e-3)
    assert jnp.allclose(mu, mu_f32, atol=5e-2, rtol=5e-2)
    assert jnp.allclose(std, std_f32, atol=5e-2, rtol=5e-2)
    assert bool(jnp.all(std > 0))

    # TODO(synk): Actor.forward returns a torch.distributions.Normal object and
    # Actor.sample does rsample/tanh/log_prob; those are host-side stochastic
    # glue — the kernel returns the distribution parameters (mu, std).
    print("KERNEL_OK")
</pallas_src>

<mosaic_0001>
module attributes {stable_mosaic.version = 11 : i64} {
  func.func @_actor_kernel(%arg0: i32, %arg1: memref<16x16xbf16, #tpu.memory_space<vmem>>, %arg2: memref<16x256xbf16, #tpu.memory_space<vmem>>, %arg3: memref<1x256xf32, #tpu.memory_space<vmem>>, %arg4: memref<256x256xbf16, #tpu.memory_space<vmem>>, %arg5: memref<1x256xf32, #tpu.memory_space<vmem>>, %arg6: memref<256x128xbf16, #tpu.memory_space<vmem>>, %arg7: memref<1x128xf32, #tpu.memory_space<vmem>>, %arg8: memref<16x128xf32, #tpu.memory_space<vmem>>) attributes {dimension_semantics = [#tpu.dimension_semantics<parallel>], iteration_bounds = array<i64: 1>, scalar_prefetch = 0 : i64, scratch_operands = 0 : i64, tpu.core_type = #tpu.core_type<tc>, window_params = [{transform_indices = @transform_0, window_bounds = array<i64: 16, 16>}, {pipeline_mode = #tpu.pipeline_mode<synchronous>, transform_indices = @transform_1, window_bounds = array<i64: 16, 256>}, {pipeline_mode = #tpu.pipeline_mode<synchronous>, transform_indices = @transform_2, window_bounds = array<i64: 1, 256>}, {pipeline_mode = #tpu.pipeline_mode<synchronous>, transform_indices = @transform_3, window_bounds = array<i64: 256, 256>}, {pipeline_mode = #tpu.pipeline_mode<synchronous>, transform_indices = @transform_4, window_bounds = array<i64: 1, 256>}, {pipeline_mode = #tpu.pipeline_mode<synchronous>, transform_indices = @transform_5, window_bounds = array<i64: 256, 128>}, {pipeline_mode = #tpu.pipeline_mode<synchronous>, transform_indices = @transform_6, window_bounds = array<i64: 1, 128>}, {transform_indices = @transform_7, window_bounds = array<i64: 16, 128>}]} {
    %c0 = arith.constant 0 : index
    %c0_0 = arith.constant 0 : index
    %0 = vector.load %arg1[%c0, %c0_0] : memref<16x16xbf16, #tpu.memory_space<vmem>>, vector<16x16xbf16>
    %c0_1 = arith.constant 0 : index
    %c0_2 = arith.constant 0 : index
    %1 = vector.load %arg2[%c0_1, %c0_2] : memref<16x256xbf16, #tpu.memory_space<vmem>>, vector<16x256xbf16>
    %cst = arith.constant dense<0.000000e+00> : vector<16x256xf32>
    %2 = tpu.matmul %0, %1, %cst {dimension_numbers = #tpu.dot_dimension_numbers<[1], [0], [0], [1], [0, 0, 1, 1], [], []>} : vector<16x16xbf16>, vector<16x256xbf16>, vector<16x256xf32> -> vector<16x256xf32>
    %c0_3 = arith.constant 0 : index
    %c0_4 = arith.constant 0 : index
    %3 = vector.load %arg3[%c0_3, %c0_4] : memref<1x256xf32, #tpu.memory_space<vmem>>, vector<1x256xf32>
    %4 = vector.broadcast %3 : vector<1x256xf32> to vector<16x256xf32>
    %5 = arith.addf %2, %4 : vector<16x256xf32>
    %cst_5 = arith.constant 0.000000e+00 : f32
    %6 = vector.broadcast %cst_5 : f32 to vector<16x256xf32>
    %7 = arith.maximumf %5, %6 : vector<16x256xf32>
    %8 = arith.truncf %7 : vector<16x256xf32> to vector<16x256xbf16>
    %c0_6 = arith.constant 0 : index
    %c0_7 = arith.constant 0 : index
    %9 = vector.load %arg4[%c0_6, %c0_7] : memref<256x256xbf16, #tpu.memory_space<vmem>>, vector<256x256xbf16>
    %cst_8 = arith.constant dense<0.000000e+00> : vector<16x256xf32>
    %10 = tpu.matmul %8, %9, %cst_8 {dimension_numbers = #tpu.dot_dimension_numbers<[1], [0], [0], [1], [0, 0, 1, 1], [], []>} : vector<16x256xbf16>, vector<256x256xbf16>, vector<16x256xf32> -> vector<16x256xf32>
    %c0_9 = arith.constant 0 : index
    %c0_10 = arith.constant 0 : index
    %11 = vector.load %arg5[%c0_9, %c0_10] : memref<1x256xf32, #tpu.memory_space<vmem>>, vector<1x256xf32>
    %12 = vector.broadcast %11 : vector<1x256xf32> to vector<16x256xf32>
    %13 = arith.addf %10, %12 : vector<16x256xf32>
    %cst_11 = arith.constant 0.000000e+00 : f32
    %14 = vector.broadcast %cst_11 : f32 to vector<16x256xf32>
    %15 = arith.maximumf %13, %14 : vector<16x256xf32>
    %16 = arith.truncf %15 : vector<16x256xf32> to vector<16x256xbf16>
    %c0_12 = arith.constant 0 : index
    %c0_13 = arith.constant 0 : index
    %17 = vector.load %arg6[%c0_12, %c0_13] : memref<256x128xbf16, #tpu.memory_space<vmem>>, vector<256x128xbf16>
    %cst_14 = arith.constant dense<0.000000e+00> : vector<16x128xf32>
    %18 = tpu.matmul %16, %17, %cst_14 {dimension_numbers = #tpu.dot_dimension_numbers<[1], [0], [0], [1], [0, 0, 1, 1], [], []>} : vector<16x256xbf16>, vector<256x128xbf16>, vector<16x128xf32> -> vector<16x128xf32>
    %c0_15 = arith.constant 0 : index
    %c0_16 = arith.constant 0 : index
    %19 = vector.load %arg7[%c0_15, %c0_16] : memref<1x128xf32, #tpu.memory_space<vmem>>, vector<1x128xf32>
    %20 = vector.broadcast %19 : vector<1x128xf32> to vector<16x128xf32>
    %21 = arith.addf %18, %20 : vector<16x128xf32>
    %22 = tpu.iota {dimensions = array<i32: 1>} : vector<16x128xi32>
    %cst_17 = arith.constant -2.000000e+01 : f32
    %cst_18 = arith.constant 2.000000e+00 : f32
    %23 = vector.broadcast %cst_17 : f32 to vector<16x128xf32>
    %24 = arith.maximumf %23, %21 : vector<16x128xf32>
    %25 = vector.broadcast %cst_18 : f32 to vector<16x128xf32>
    %26 = arith.minimumf %25, %24 : vector<16x128xf32>
    %27 = math.exp %26 : vector<16x128xf32>
    %c4_i32 = arith.constant 4 : i32
    %28 = vector.broadcast %c4_i32 : i32 to vector<16x128xi32>
    %29 = arith.cmpi slt, %22, %28 : vector<16x128xi32>
    %30 = arith.select %29, %21, %27 : vector<16x128xi1>, vector<16x128xf32>
    %c0_19 = arith.constant 0 : index
    %c0_20 = arith.constant 0 : index
    %31 = vector.load %arg8[%c0_19, %c0_20] : memref<16x128xf32, #tpu.memory_space<vmem>>, vector<16x128xf32>
    tpu.vector_store %arg8[%c0_19, %c0_20], %30 {strides = array<i32>} : memref<16x128xf32, #tpu.memory_space<vmem>>, vector<16x128xf32>,
    return
  }
  func.func @transform_0(%arg0: i32) -> (i32, i32) {
    %c0_i32 = arith.constant 0 : i32
    %c0_i32_0 = arith.constant 0 : i32
    return %arg0, %c0_i32 : i32, i32
  }
  func.func @transform_1(%arg0: i32) -> (i32, i32) {
    %c0_i32 = arith.constant 0 : i32
    %c0_i32_0 = arith.constant 0 : i32
    %c0_i32_1 = arith.constant 0 : i32
    return %c0_i32, %c0_i32_0 : i32, i32
  }
  func.func @transform_2(%arg0: i32) -> (i32, i32) {
    %c0_i32 = arith.constant 0 : i32
    %c0_i32_0 = arith.constant 0 : i32
    %c0_i32_1 = arith.constant 0 : i32
    return %c0_i32, %c0_i32_0 : i32, i32
  }
  func.func @transform_3(%arg0: i32) -> (i32, i32) {
    %c0_i32 = arith.constant 0 : i32
    %c0_i32_0 = arith.constant 0 : i32
    %c0_i32_1 = arith.constant 0 : i32
    return %c0_i32, %c0_i32_0 : i32, i32
  }
  func.func @transform_4(%arg0: i32) -> (i32, i32) {
    %c0_i32 = arith.constant 0 : i32
    %c0_i32_0 = arith.constant 0 : i32
    %c0_i32_1 = arith.constant 0 : i32
    return %c0_i32, %c0_i32_0 : i32, i32
  }
  func.func @transform_5(%arg0: i32) -> (i32, i32) {
    %c0_i32 = arith.constant 0 : i32
    %c0_i32_0 = arith.constant 0 : i32
    %c0_i32_1 = arith.constant 0 : i32
    return %c0_i32, %c0_i32_0 : i32, i32
  }
  func.func @transform_6(%arg0: i32) -> (i32, i32) {
    %c0_i32 = arith.constant 0 : i32
    %c0_i32_0 = arith.constant 0 : i32
    %c0_i32_1 = arith.constant 0 : i32
    return %c0_i32, %c0_i32_0 : i32, i32
  }
  func.func @transform_7(%arg0: i32) -> (i32, i32) {
    %c0_i32 = arith.constant 0 : i32
    %c0_i32_0 = arith.constant 0 : i32
    return %arg0, %c0_i32 : i32, i32
  }
}

</mosaic_0001>

<bundles_post_ra>
// kernel: actor_forward.1
= control target key start
LH: loop header
LB: loop body
LE: loop exit
PB: predicated region body
PF: predicated region fallthrough
CT: control target
= control target key end

     0   :  { %12 = vsyncpa [#allocation3], 0  ;;  %s967_s0 = inlined_call_operand.vmem [shape: bf16[16,16], index: 0, kind: input, shape index: {}]   ;;  %s968_s1 = inlined_call_operand.vmem [shape: bf16[16,256], index: 1, kind: input, shape index: {}]   ;;  %s969_s2 = inlined_call_operand.vmem [shape: f32[1,256], index: 2, kind: input, shape index: {}]   ;;  %s970_s3 = inlined_call_operand.hbm [shape: bf16[256,256], index: 3, kind: input, shape index: {}]   ;;  %s971_s4 = inlined_call_operand.vmem [shape: f32[1,256], index: 4, kind: input, shape index: {}]   ;;  %s972_s5 = inlined_call_operand.hbm [shape: bf16[256,128], index: 5, kind: input, shape index: {}]   ;;  %s973_s6 = inlined_call_operand.vmem [shape: f32[1,128], index: 6, kind: input, shape index: {}]   ;;  %s974_s7 = inlined_call_operand.vmem [shape: f32[16,128], index: 7, kind: output, shape index: {}]  }
   0x1   :  { %s24_s26 = sshll.u32 %s970_s3, 4  ;;  %s25_s26 = int_to_ptr.hbm [resolvable:$true] %s24_s26 }
   0x2   :  { %13 = vsyncpa [#allocation5], 0  ;;  %s883_s27 = smov [#allocation2]   ;;  %s39_s8 = sshll.u32 %s972_s5, 4  ;;  %s40_s8 = int_to_ptr.hbm [resolvable:$true] %s39_s8 }
   0x3   :  { %s26_s28 = sshll.u32 %s883_s27, 4  ;;  %s884_s9 = smov 128   ;;  %s27_s28 = int_to_ptr.vmem [resolvable:$true] %s26_s28 }
   0x4   :  { %s885_s10 = smov 8   ;;  %s886_s11 = smov [#allocation4]  }
   0x5   :  { %32 = dma.hbm_to_vmem [thread:$0]  %s25_s26, 4096, %s27_s28, [#allocation3], %s884_s9, %s884_s9, %s885_s10  }
   0x6   :  { %s41_s12 = sshll.u32 %s886_s11, 4  ;;  %s887_s13 = smov 64   ;;  %s42_s12 = int_to_ptr.vmem [resolvable:$true] %s41_s12 }
   0x7   :  { %s888_s14 = smov 4  }
   0x8   :  { %47 = dma.hbm_to_vmem [thread:$0]  %s40_s8, 2048, %s42_s12, [#allocation5], %s887_s13, %s887_s13, %s888_s14  }
   0x9   :  { %879 = dma.done.wait [#allocation3], 4096  }
   0xa   :  { %880 = vsyncadd [#allocation3], 4294963200 }
   0xb   :  { %881 = dma.done.wait [#allocation5], 2048  }
   0xc   :  { %882 = vsyncadd [#allocation5], 4294965248  ;;  %v569_v0 = vld [vmem:[%s968_s1] sm:$0xf]  ;;  %v771_v1 = vld [vmem:[%s968_s1 + $0x4] sm:$0xf0] }
   0xd   :  { %v770_v2 = vld [vmem:[%s968_s1 + $0x4] sm:$0xf]  ;;  %v570_v3 = vor.u32 %v771_v1, %v569_v0  ;;  %v571_v4 = vld [vmem:[%s968_s1 + $0x8] sm:$0xf0]  ;;  %vm84_vm0 = vcmask 130048  }
   0xe   :  { %v769_v5 = vld [vmem:[%s967_s0] sm:$0xff]  ;;  %v635_v6 = vld [vmem:[#allocation2 + $0x70] sm:$0xf]  ;;  %v574_v7 = vor.u32 %v770_v2, %v571_v4  ;;  %v787_v8 = vld [vmem:[#allocation2 + $0x74] sm:$0xf0] }
   0xf   :  { %v699_v9 = vld [vmem:[#allocation2 + $0xf0] sm:$0xf]  ;;  %v803_v10 = vld [vmem:[#allocation2 + $0xf4] sm:$0xf0]  ;;  %95 = vmatpush.bf16.msra.mxu0 %v570_v3  ;;  %v636_v11 = vor.u32 %v787_v8, %v635_v6  ;;  %v786_v13 = vld [vmem:[#allocation2 + $0x74] sm:$0xf] }
  0x10   :  { %v700_v12 = vor.u32 %v803_v10, %v699_v9  ;;  %v637_v14 = vld [vmem:[#allocation2 + $0x78] sm:$0xf0]  ;;  %v802_v15 = vld [vmem:[#allocation2 + $0xf4] sm:$0xf]  ;;  %109 = vmatpush.bf16.msra.mxu1 %v574_v7  ;;  %v627_v18 = vld [vmem:[#allocation2 + $0x60] sm:$0xf] }
  0x11   :  { %v640_v16 = vor.u32 %v786_v13, %v637_v14  ;;  %v701_v17 = vld [vmem:[#allocation2 + $0xf8] sm:$0xf0]  ;;  %v785_v19 = vld [vmem:[#allocation2 + $0x64] sm:$0xf0]  ;;  %320 = vmatpush.bf16.msra.mxu2 %v636_v11  ;;  %v691_v22 = vld [vmem:[#allocation2 + $0xe0] sm:$0xf] }
  0x12   :  { %334 = vmatpush.bf16.msra.mxu3 %v700_v12  ;;  %v704_v20 = vor.u32 %v802_v15, %v701_v17  ;;  %v628_v21 = vor.u32 %v785_v19, %v627_v18  ;;  %v801_v23 = vld [vmem:[#allocation2 + $0xe4] sm:$0xf0]  ;;  %v784_v24 = vld [vmem:[#allocation2 + $0x64] sm:$0xf]  ;;  %575 = vmatmul.msk.bf16.vlgmr.msra.gmra.mxu0 %vm84_vm0, %v769_v5  ;;  %v629_v26 = vld [vmem:[#allocation2 + $0x68] sm:$0xf0] }
  0x13   :  { %v692_v25 = vor.u32 %v801_v23, %v691_v22  ;;  %v800_v27 = vld [vmem:[#allocation2 + $0xe4] sm:$0xf]  ;;  %v693_v28 = vld [vmem:[#allocation2 + $0xe8] sm:$0xf0]  ;;  %576 = vmatmul.msk.bf16.vlgmr.msra.gmra.mxu1 %vm84_vm0, %v769_v5  ;;  %348 = vmatpush.bf16.msrb.mxu0 %v640_v16  ;;  %v632_v29 = vor.u32 %v784_v24, %v629_v26  ;;  %v619_v30 = vld [vmem:[#allocation2 + $0x50] sm:$0xf] }
  0x14   :  { %v783_v31 = vld [vmem:[#allocation2 + $0x54] sm:$0xf0]  ;;  %v683_v32 = vld [vmem:[#allocation2 + $0xd0] sm:$0xf]  ;;  %362 = vmatpush.bf16.msrb.mxu1 %v704_v20  ;;  %v696_v33 = vor.u32 %v800_v27, %v693_v28  ;;  %v782_v35 = vld [vmem:[#allocation2 + $0x54] sm:$0xf] }
  0x15   :  { %v799_v34 = vld [vmem:[#allocation2 + $0xd4] sm:$0xf0]  ;;  %v621_v36 = vld [vmem:[#allocation2 + $0x58] sm:$0xf0]  ;;  %321 = vmatpush.bf16.msra.mxu2 %v628_v21  ;;  %v620_v37 = vor.u32 %v783_v31, %v619_v30  ;;  %v798_v39 = vld [vmem:[#allocation2 + $0xd4] sm:$0xf] }
  0x16   :  { %335 = vmatpush.bf16.msra.mxu3 %v692_v25  ;;  %v684_v38 = vor.u32 %v799_v34, %v683_v32  ;;  %v685_v40 = vld [vmem:[#allocation2 + $0xd8] sm:$0xf0]  ;;  %v611_v41 = vld [vmem:[#allocation2 + $0x40] sm:$0xf]  ;;  %v781_v42 = vld [vmem:[#allocation2 + $0x44] sm:$0xf0]  ;;  %v624_v45 = vor.u32 %v782_v35, %v621_v36 }
  0x17   :  { %v675_v43 = vld [vmem:[#allocation2 + $0xc0] sm:$0xf]  ;;  %v797_v44 = vld [vmem:[#allocation2 + $0xc4] sm:$0xf0]  ;;  %349 = vmatpush.bf16.msrb.mxu0 %v632_v29  ;;  %v688_v46 = vor.u32 %v798_v39, %v685_v40  ;;  %v780_v47 = vld [vmem:[#allocation2 + $0x44] sm:$0xf]  ;;  %v612_v49 = vor.u32 %v781_v42, %v611_v41 }
  0x18   :  { %363 = vmatpush.bf16.msrb.mxu1 %v696_v33  ;;  %v613_v48 = vld [vmem:[#allocation2 + $0x48] sm:$0xf0]  ;;  %v676_v50 = vor.u32 %v797_v44, %v675_v43  ;;  %v796_v51 = vld [vmem:[#allocation2 + $0xc4] sm:$0xf]  ;;  %v603_v55 = vld [vmem:[#allocation2 + $0x30] sm:$0xf] }
  0x19   :  { %322 = vmatpush.bf16.msra.mxu2 %v620_v37  ;;  %v677_v52 = vld [vmem:[#allocation2 + $0xc8] sm:$0xf0]  ;;  %v616_v53 = vor.u32 %v780_v47, %v613_v48  ;;  %v779_v56 = vld [vmem:[#allocation2 + $0x34] sm:$0xf0]  ;;  %v667_v57 = vld [vmem:[#allocation2 + $0xb0] sm:$0xf] }
  0x1a   :  { %336 = vmatpush.bf16.msra.mxu3 %v684_v38  ;;  %v680_v54 = vor.u32 %v796_v51, %v677_v52  ;;  %v604_v58 = vor.u32 %v779_v56, %v603_v55  ;;  %v795_v59 = vld [vmem:[#allocation2 + $0xb4] sm:$0xf0]  ;;  %v778_v60 = vld [vmem:[#allocation2 + $0x34] sm:$0xf]  ;;  %v605_v61 = vld [vmem:[#allocation2 + $0x38] sm:$0xf0] }
  0x1b   :  { %350 = vmatpush.bf16.msrb.mxu0 %v624_v45  ;;  %v668_v62 = vor.u32 %v795_v59, %v667_v57  ;;  %v608_v63 = vor.u32 %v778_v60, %v605_v61  ;;  %v794_v0 = vld [vmem:[#allocation2 + $0xb4] sm:$0xf]  ;;  %v669_v1 = vld [vmem:[#allocation2 + $0xb8] sm:$0xf0]  ;;  %v595_v3 = vld [vmem:[#allocation2 + $0x20] sm:$0xf] }
  0x1c   :  { %364 = vmatpush.bf16.msrb.mxu1 %v688_v46  ;;  %v672_v2 = vor.u32 %v794_v0, %v669_v1  ;;  %v777_v4 = vld [vmem:[#allocation2 + $0x24] sm:$0xf0]  ;;  %v659_v6 = vld [vmem:[#allocation2 + $0xa0] sm:$0xf]  ;;  %v776_v8 = vld [vmem:[#allocation2 + $0x24] sm:$0xf] }
  0x1d   :  { %323 = vmatpush.bf16.msra.mxu2 %v612_v49  ;;  %v596_v5 = vor.u32 %v777_v4, %v595_v3  ;;  %v793_v7 = vld [vmem:[#allocation2 + $0xa4] sm:$0xf0]  ;;  %v597_v10 = vld [vmem:[#allocation2 + $0x28] sm:$0xf0]  ;;  %v792_v11 = vld [vmem:[#allocation2 + $0xa4] sm:$0xf] }
  0x1e   :  { %337 = vmatpush.bf16.msra.mxu3 %v676_v50  ;;  %v660_v9 = vor.u32 %v793_v7, %v659_v6  ;;  %v661_v12 = vld [vmem:[#allocation2 + $0xa8] sm:$0xf0]  ;;  %v600_v13 = vor.u32 %v776_v8, %v597_v10  ;;  %v587_v15 = vld [vmem:[#allocation2 + $0x10] sm:$0xf]  ;;  %v775_v16 = vld [vmem:[#allocation2 + $0x14] sm:$0xf0] }
  0x1f   :  { %351 = vmatpush.bf16.msrb.mxu0 %v616_v53  ;;  %v664_v14 = vor.u32 %v792_v11, %v661_v12  ;;  %v651_v17 = vld [vmem:[#allocation2 + $0x90] sm:$0xf]  ;;  %v588_v18 = vor.u32 %v775_v16, %v587_v15  ;;  %v791_v19 = vld [vmem:[#allocation2 + $0x94] sm:$0xf0]  ;;  %v774_v20 = vld [vmem:[#allocation2 + $0x14] sm:$0xf] }
  0x20   :  { %365 = vmatpush.bf16.msrb.mxu1 %v680_v54  ;;  %v589_v21 = vld [vmem:[#allocation2 + $0x18] sm:$0xf0]  ;;  %v652_v22 = vor.u32 %v791_v19, %v651_v17  ;;  %v790_v24 = vld [vmem:[#allocation2 + $0x94] sm:$0xf]  ;;  %v579_v27 = vld [vmem:[#allocation2] sm:$0xf] }
  0x21   :  { %324 = vmatpush.bf16.msra.mxu2 %v604_v58  ;;  %v592_v23 = vor.u32 %v774_v20, %v589_v21  ;;  %v653_v25 = vld [vmem:[#allocation2 + $0x98] sm:$0xf0]  ;;  %v773_v28 = vld [vmem:[#allocation2 + $0x4] sm:$0xf0]  ;;  %v643_v29 = vld [vmem:[#allocation2 + $0x80] sm:$0xf] }
  0x22   :  { %338 = vmatpush.bf16.msra.mxu3 %v668_v62  ;;  %v656_v26 = vor.u32 %v790_v24, %v653_v25  ;;  %v580_v30 = vor.u32 %v773_v28, %v579_v27  ;;  %v789_v31 = vld [vmem:[#allocation2 + $0x84] sm:$0xf0]  ;;  %v772_v32 = vld [vmem:[#allocation2 + $0x4] sm:$0xf]  ;;  %v581_v33 = vld [vmem:[#allocation2 + $0x8] sm:$0xf0] }
  0x23   :  { %352 = vmatpush.bf16.msrb.mxu0 %v608_v63  ;;  %v644_v34 = vor.u32 %v789_v31, %v643_v29  ;;  %v584_v35 = vor.u32 %v772_v32, %v581_v33  ;;  %v788_v36 = vld [vmem:[#allocation2 + $0x84] sm:$0xf]  ;;  %v645_v37 = vld [vmem:[#allocation2 + $0x88] sm:$0xf0]  ;;  %v819_v39 = vld [vmem:[#allocation4 + $0x78] sm:$0xff] }
  0x24   :  { %366 = vmatpush.bf16.msrb.mxu1 %v672_v2  ;;  %v648_v38 = vor.u32 %v788_v36, %v645_v37  ;;  %v811_v40 = vld [vmem:[#allocation4 + $0x38] sm:$0xff]  ;;  %v818_v41 = vld [vmem:[#allocation4 + $0x70] sm:$0xff]  ;;  %v817_v43 = vld [vmem:[#allocation4 + $0x68] sm:$0xff] }
  0x25   :  { %325 = vmatpush.bf16.msra.mxu2 %v596_v5  ;;  %v810_v42 = vld [vmem:[#allocation4 + $0x30] sm:$0xff]  ;;  %v816_v44 = vld [vmem:[#allocation4 + $0x60] sm:$0xff]  ;;  %v809_v62 = vld [vmem:[#allocation4 + $0x28] sm:$0xff] }
  0x26   :  { %339 = vmatpush.bf16.msra.mxu3 %v660_v9  ;;  %v63_v45 = vld [vmem:[%s969_s2] sm:$0x3]  ;;  %v815_v63 = vld [vmem:[#allocation4 + $0x58] sm:$0xff]  ;;  %v814_v1 = vld [vmem:[#allocation4 + $0x50] sm:$0xff] }
  0x27   :  { %353 = vmatpush.bf16.msrb.mxu0 %v600_v13  ;;  %v65_v48 = vperm.slane %v63_v45, 0  ;;  %v66_v49 = vperm.slane %v63_v45, 1  ;;  %v808_v0 = vld [vmem:[#allocation4 + $0x20] sm:$0xff]  ;;  %v807_v2 = vld [vmem:[#allocation4 + $0x18] sm:$0xff]  ;;  %v813_v3 = vld [vmem:[#allocation4 + $0x48] sm:$0xff] }
  0x28   :  { %367 = vmatpush.bf16.msrb.mxu1 %v664_v14  ;;  %v806_v4 = vld [vmem:[#allocation4 + $0x10] sm:$0xff]  ;;  %v812_v5 = vld [vmem:[#allocation4 + $0x40] sm:$0xff]  ;;  %v805_v6 = vld [vmem:[#allocation4 + $0x8] sm:$0xff] }
  0x29   :  { %326 = vmatpush.bf16.msra.mxu2 %v588_v18  ;;  %v804_v7 = vld [vmem:[#allocation4] sm:$0xff] }
  0x2a   :  { %340 = vmatpush.bf16.msra.mxu3 %v652_v22  ;;  %v154_v8 = vld [vmem:[%s971_s4] sm:$0x3] }
  0x2b   :  { %354 = vmatpush.bf16.msrb.mxu0 %v592_v23  ;;  %v157_v10 = vperm.slane %v154_v8, 1  ;;  %v156_v14 = vperm.slane %v154_v8, 0  ;;  %v826_v33 = vld [vmem:[%s973_s6] ss:$0 sm:$0xff] }
  0x2c   :  { %368 = vmatpush.bf16.msrb.mxu1 %v656_v26 }
  0x2d   :  { %327 = vmatpush.bf16.msra.mxu2 %v580_v30 }
  0x2e   :  { %341 = vmatpush.bf16.msra.mxu3 %v644_v34 }
  0x2f   :  { %355 = vmatpush.bf16.msrb.mxu0 %v584_v35 }
  0x30   :  { %369 = vmatpush.bf16.msrb.mxu1 %v648_v38 }
  0x31   :  { %514 = vmatpush.bf16.msrb.mxu2 %v811_v40 }
  0x32   :  { %528 = vmatpush.bf16.msrb.mxu3 %v819_v39  ;;  %v542_v39 = vlaneseq }
  0x34   :  { %v543_v45 = vand.u32 127, %v542_v39 }
  0x35   :  { %515 = vmatpush.bf16.msrb.mxu2 %v810_v42 }
  0x36   :  { %529 = vmatpush.bf16.msrb.mxu3 %v818_v41  ;;  %vm552_vm1 = vcmp.lt.s32.totalorder %v543_v45, 4 }
  0x39   :  { %516 = vmatpush.bf16.msrb.mxu2 %v809_v62 }
  0x3a   :  { %530 = vmatpush.bf16.msrb.mxu3 %v817_v43 }
  0x3d   :  { %517 = vmatpush.bf16.msrb.mxu2 %v808_v0 }
  0x3e   :  { %531 = vmatpush.bf16.msrb.mxu3 %v816_v44 }
  0x41   :  { %518 = vmatpush.bf16.msrb.mxu2 %v807_v2 }
  0x42   :  { %532 = vmatpush.bf16.msrb.mxu3 %v815_v63 }
  0x45   :  { %519 = vmatpush.bf16.msrb.mxu2 %v806_v4 }
  0x46   :  { %533 = vmatpush.bf16.msrb.mxu3 %v814_v1 }
  0x49   :  { %520 = vmatpush.bf16.msrb.mxu2 %v805_v6 }
  0x4a   :  { %534 = vmatpush.bf16.msrb.mxu3 %v813_v3 }
  0x4d   :  { %521 = vmatpush.bf16.msrb.mxu2 %v804_v7 }
  0x4e   :  { %535 = vmatpush.bf16.msrb.mxu3 %v812_v5 }
  0x8f   :  { %v97_v46 = vpop.f32.mrf.mxu0 }
  0x90   :  { %v111_v47 = vpop.f32.mrf.mxu1  ;;  %v98_v50 = vadd.f32 %v97_v46, %v65_v48 }
  0x91   :  { %v112_v51 = vadd.f32 %v111_v47, %v66_v49 }
  0x92   :  { %v116_v56 = vmax.f32 %v98_v50, 0.0 }
  0x93   :  { %v117_v58 = vmax.f32 %v112_v51, 0.0 }
  0x97   :  { %v99_v52 = vpop.f32.mrf.mxu0 }
  0x98   :  { %v100_v53 = vadd.f32 %v99_v52, %v65_v48  ;;  %v113_v54 = vpop.f32.mrf.mxu1 }
  0x99   :  { %v114_v55 = vadd.f32 %v113_v54, %v66_v49 }
  0x9a   :  { %v118_v57 = vmax.f32 %v100_v53, 0.0 }
  0x9b   :  { %v119_v59 = vmax.f32 %v114_v55, 0.0 }
  0x9c   :  { %v120_v60 = vpack.c.bf16 %v118_v57, %v116_v56 }
  0x9d   :  { %v121_v61 = vpack.c.bf16 %v119_v59, %v117_v58 }
  0x9e   :  { %328 = vmatmul.bf16.vlgmr.msra.gmra.mxu2 %v120_v60  ;;  %356 = vmatmul.bf16.vlgmr.msrb.gmra.mxu0 %v120_v60 }
  0x9f   :  { %342 = vmatmul.bf16.vlgmr.msra.gmra.mxu3 %v121_v61  ;;  %370 = vmatmul.bf16.vlgmr.msrb.gmra.mxu1 %v121_v61 }
 0x11b   :  { %v357_v9 = vpop.f32.mrf.mxu0 }
 0x11c   :  { %v371_v11 = vpop.f32.mrf.mxu1  ;;  %v358_v12 = vadd.f32 %v357_v9, %v157_v10 }
 0x11e   :  { %v372_v17 = vadd.f32 %v371_v11, %v358_v12 }
 0x120   :  { %v377_v22 = vmax.f32 %v372_v17, 0.0 }
 0x121   :  { %v329_v13 = vpop.f32.mrf.mxu2 }
 0x122   :  { %v343_v15 = vpop.f32.mrf.mxu3  ;;  %v330_v20 = vadd.f32 %v329_v13, %v156_v14 }
 0x123   :  { %v359_v16 = vpop.f32.mrf.mxu0 }
 0x124   :  { %v360_v18 = vadd.f32 %v359_v16, %v157_v10  ;;  %v373_v19 = vpop.f32.mrf.mxu1  ;;  %v344_v25 = vadd.f32 %v343_v15, %v330_v20 }
 0x126   :  { %v374_v21 = vadd.f32 %v373_v19, %v360_v18  ;;  %v376_v30 = vmax.f32 %v344_v25, 0.0 }
 0x128   :  { %v379_v23 = vmax.f32 %v374_v21, 0.0 }
 0x129   :  { %v331_v24 = vpop.f32.mrf.mxu2 }
 0x12a   :  { %v381_v26 = vpack.c.bf16 %v379_v23, %v377_v22  ;;  %v332_v27 = vadd.f32 %v331_v24, %v156_v14  ;;  %v345_v28 = vpop.f32.mrf.mxu3 }
 0x12c   :  { %v346_v29 = vadd.f32 %v345_v28, %v332_v27  ;;  %536 = vmatmul.bf16.vlgmr.msrb.gmra.mxu3 %v381_v26 }
 0x12e   :  { %v378_v31 = vmax.f32 %v346_v29, 0.0 }
 0x130   :  { %v380_v32 = vpack.c.bf16 %v378_v31, %v376_v30 }
 0x132   :  { %522 = vmatmul.bf16.vlgmr.msrb.gmra.mxu2 %v380_v32 }
 0x1af   :  { %v537_v34 = vpop.f32.mrf.mxu3 }
 0x1b5   :  { %v523_v35 = vpop.f32.mrf.mxu2 }
 0x1b6   :  { %v524_v36 = vadd.f32 %v826_v33, %v523_v35 }
 0x1b7   :  { %v539_v44 = vpop.f32.mrf.mxu3 }
 0x1b8   :  { %v538_v37 = vadd.f32 %v537_v34, %v524_v36 }
 0x1ba   :  { %v544_v38 = vmax.f32 %v538_v37, -20.0 }
 0x1bc   :  { %v546_v40 = vmin.f32 %v544_v38, 2.0 }
 0x1bd   :  { %v525_v41 = vpop.f32.mrf.mxu2 }
 0x1be   :  { %v548_v42 = vmul.f32 1.442695, %v546_v40  ;;  %v526_v43 = vadd.f32 %v826_v33, %v525_v41 }
 0x1c0   :  { %827 = vpow2.f32 %v548_v42  ;;  %v540_v46 = vadd.f32 %v539_v44, %v526_v43 }
 0x1c2   :  { %v545_v47 = vmax.f32 %v540_v46, -20.0 }
 0x1c4   :  { %v547_v48 = vmin.f32 %v545_v47, 2.0 }
 0x1c6   :  { %v828_v49 = vpop.eup %827  ;;  %v550_v50 = vmul.f32 1.442695, %v547_v48 }
 0x1c7   :  { %v553_v51 = vsel %vm552_vm1, %v538_v37, %v828_v49 }
 0x1c8   :  { %555 = vst [vmem:[%s974_s7] sm:$0xff] %v553_v51  ;;  %829 = vpow2.f32 %v550_v50 }
 0x1ce   :  { %v830_v52 = vpop.eup %829 }
 0x1cf   :  { %v554_v53 = vsel %vm552_vm1, %v540_v46, %v830_v52 }
 0x1d0   :  { %556 = vst [vmem:[%s974_s7 + $0x8] sm:$0xff] %v554_v53 }
 0x1d1   :  { %561 = vsyncpa [#allocation3], 1 }
 0x1d2   :  { %562 = vsyncpa [#allocation5], 1 }

</bundles_post_ra>
